<compile_context>
chip_gen: v7x
topology: tpu7x:2x2x1
jax: 0.10.0
libtpu: 0.0.40
codegen_flags: <defaults>
</compile_context>

<pallas_src>
import jax
import jax.numpy as jnp
from jax import lax
from jax.experimental import pallas as pl
from jax.experimental.pallas import tpu as pltpu


def _round_up(v, m):
    return ((v + m - 1) // m) * m


def _lstm_start_kernel(W, Bp, H):
    """Kernel closure over static (W, Bp, H)."""

    def kernel(x_ref, wih_ref, whh_ref, b_ref, wlin_ref, blin_ref, out_ref, hs_ref):
        # x_ref    : (W*Bp, N)   time-major flattened input rows (row t*Bp + b = x[b, :, t])
        # wih_ref  : (N, 4H)     input->gates weights (transposed PyTorch W_ih)
        # whh_ref  : (H, 4H)     hidden->gates weights (transposed PyTorch W_hh)
        # b_ref    : (1, 4H)     b_ih + b_hh (folded once)
        # wlin_ref : (H, Np)     output linear weights (transposed, lane-padded to 128)
        # blin_ref : (1, Np)     output linear bias (lane-padded)
        # out_ref  : (W*Bp, Np)  sigmoid(Linear(h_t)), same time-major row ordering
        # hs_ref   : (W*Bp, H)   VMEM scratch holding all hidden states
        acc_dt = jnp.float32

        # Hoisted invariant loads (read once, closed over by the unrolled loop).
        wih = wih_ref[...]
        whh = whh_ref[...]
        bias = b_ref[...]

        # (1) Hoisted input projection: one big MXU matmul + folded bias, off the
        #     serial path.
        gx = jnp.dot(x_ref[...], wih, preferred_element_type=acc_dt) + bias   # (W*Bp, 4H)

        h = jnp.zeros((Bp, H), acc_dt)
        c = jnp.zeros((Bp, H), acc_dt)

        # (2) Fully-unrolled recurrence: a single h @ W_hh MXU push per timestep.
        #     Bp is a multiple of 8, so every slice / scratch store is tile-aligned.
        for t in range(W):
            lo = t * Bp
            gates = gx[lo:lo + Bp, :] + jnp.dot(
                h.astype(whh.dtype), whh, preferred_element_type=acc_dt)      # (Bp, 4H)

            # Full-tile activations on the EUP (2 pushes instead of 4 narrow ones),
            # then static per-gate lane slices.  PyTorch gate order: i, f, g, o.
            sg = jax.nn.sigmoid(gates)
            th = jnp.tanh(gates)
            i_g = sg[:, 0 * H:1 * H]
            f_g = sg[:, 1 * H:2 * H]
            g_g = th[:, 2 * H:3 * H]
            o_g = sg[:, 3 * H:4 * H]

            c = f_g * c + i_g * g_g
            h = o_g * jnp.tanh(c)
            hs_ref[lo:lo + Bp, :] = h          # aligned (Bp, H) store into VMEM scratch

        # (3) Hoisted output head: one matmul + bias + sigmoid over all timesteps,
        #     single lane-dense (Np = k*128) store to out_ref.
        y = jnp.dot(hs_ref[...].astype(wlin_ref.dtype), wlin_ref[...],
                    preferred_element_type=acc_dt) + blin_ref[...]            # (W*Bp, Np)
        out_ref[...] = jax.nn.sigmoid(y)

    return kernel


def lstm_start_forward(x, params, *, matmul_dtype=jnp.float32):
    """x: (B, nodes, window) float32.  Returns (B, nodes, window).

    `matmul_dtype=jnp.bfloat16` feeds the MXU bf16 operands (f32 accumulation) — the
    recommended setting on v6e/v7x; gate nonlinearities always run in f32.
    """
    w_ih, w_hh, b_ih, b_hh, w_lin, b_lin = (
        params["w_ih"], params["w_hh"], params["b_ih"],
        params["b_hh"], params["w_lin"], params["b_lin"],
    )
    B, N, Wn = x.shape
    H = w_hh.shape[1]                          # w_hh: (4H, H)

    Bp = _round_up(B, 8)                       # full sublane tiles -> aligned per-step slices
    Np = _round_up(N, 128)                     # lane-dense output store (unmasked vst)

    # Wrapper glue (tiny one-time ops): time-major flatten + zero-pad of x,
    # pre-transposed weights, folded biases, lane-padded output head.
    xs = jnp.transpose(x, (2, 0, 1))                                         # (W, B, N)
    if Bp != B:
        xs = jnp.pad(xs, ((0, 0), (0, Bp - B), (0, 0)))                      # zero rows: inert
    x2d = xs.reshape(Wn * Bp, N).astype(matmul_dtype)                        # (W*Bp, N)

    wih_T = jnp.transpose(w_ih).astype(matmul_dtype)                         # (N, 4H)
    whh_T = jnp.transpose(w_hh).astype(matmul_dtype)                         # (H, 4H)
    bias = (b_ih + b_hh).reshape(1, 4 * H).astype(jnp.float32)               # (1, 4H)

    wlin_T = jnp.transpose(w_lin).astype(matmul_dtype)                       # (H, N)
    blin = b_lin.reshape(1, N).astype(jnp.float32)                           # (1, N)
    if Np != N:
        wlin_T = jnp.pad(wlin_T, ((0, 0), (0, Np - N)))                      # zero cols
        blin = jnp.pad(blin, ((0, 0), (0, Np - N)))

    out2d = pl.pallas_call(
        _lstm_start_kernel(Wn, Bp, H),
        out_shape=jax.ShapeDtypeStruct((Wn * Bp, Np), jnp.float32),
        in_specs=[pl.BlockSpec(memory_space=pltpu.MemorySpace.VMEM)] * 6,
        out_specs=pl.BlockSpec(memory_space=pltpu.MemorySpace.VMEM),
        scratch_shapes=[pltpu.VMEM((Wn * Bp, H), jnp.float32)],
    )(x2d, wih_T, whh_T, bias, wlin_T, blin)

    # (W*Bp, Np) time-major rows -> drop batch/lane padding -> (B, N, W)
    out = out2d.reshape(Wn, Bp, Np)[:, :B, :N]
    return jnp.transpose(out, (1, 2, 0))


def _reference(x, params):
    """Pure-JAX reference (mirrors torch.nn.LSTM single layer + Linear + sigmoid)."""
    w_ih, w_hh, b_ih, b_hh, w_lin, b_lin = (
        params["w_ih"], params["w_hh"], params["b_ih"],
        params["b_hh"], params["w_lin"], params["b_lin"],
    )
    B, N, Wn = x.shape
    H = w_hh.shape[1]
    xs = jnp.transpose(x, (2, 0, 1))           # (W, B, N)

    def step(carry, x_t):
        h, c = carry
        gates = x_t @ w_ih.T + b_ih + h @ w_hh.T + b_hh
        i = jax.nn.sigmoid(gates[:, 0 * H:1 * H])
        f = jax.nn.sigmoid(gates[:, 1 * H:2 * H])
        g = jnp.tanh(gates[:, 2 * H:3 * H])
        o = jax.nn.sigmoid(gates[:, 3 * H:4 * H])
        c = f * c + i * g
        h = o * jnp.tanh(c)
        return (h, c), h

    h0 = jnp.zeros((B, H), jnp.float32)
    _, hs = lax.scan(step, (h0, h0), xs)       # (W, B, H)
    ys = jax.nn.sigmoid(hs @ w_lin.T + b_lin)  # (W, B, N)
    return jnp.transpose(ys, (1, 2, 0))        # (B, N, W)


def _init_params(key, in_num, hidden):
    """Deterministic param init (uniform(-1/sqrt(H), 1/sqrt(H)), like PyTorch)."""
    k = 1.0 / jnp.sqrt(jnp.float32(hidden))
    ks = jax.random.split(key, 6)
    u = lambda kk, shape: jax.random.uniform(kk, shape, jnp.float32, -k, k)
    return {
        "w_ih": u(ks[0], (4 * hidden, in_num)),
        "w_hh": u(ks[1], (4 * hidden, hidden)),
        "b_ih": u(ks[2], (4 * hidden,)),
        "b_hh": u(ks[3], (4 * hidden,)),
        "w_lin": u(ks[4], (in_num, hidden)),
        "b_lin": u(ks[5], (in_num,)),
    }


if __name__ == "__main__":
    B, N, Wn, H = 2, 4, 8, 32                  # batch, nodes (in_num), window, hidden

    key = jax.random.PRNGKey(0)
    kx, kp = jax.random.split(key)
    x = jax.random.normal(kx, (B, N, Wn), jnp.float32)
    params = _init_params(kp, N, H)

    out = jax.block_until_ready(lstm_start_forward(x, params))
    ref = jax.block_until_ready(_reference(x, params))

    assert out.shape == (B, N, Wn)
    assert jnp.allclose(out, ref, atol=1e-5, rtol=1e-5), "mismatch vs reference"
    print("KERNEL_OK")
</pallas_src>

<mosaic_0001>
module attributes {stable_mosaic.version = 11 : i64} {
  func.func @kernel(%arg0: memref<64x4xf32, #tpu.memory_space<vmem>>, %arg1: memref<4x128xf32, #tpu.memory_space<vmem>>, %arg2: memref<32x128xf32, #tpu.memory_space<vmem>>, %arg3: memref<1x128xf32, #tpu.memory_space<vmem>>, %arg4: memref<32x128xf32, #tpu.memory_space<vmem>>, %arg5: memref<1x128xf32, #tpu.memory_space<vmem>>, %arg6: memref<64x128xf32, #tpu.memory_space<vmem>>, %arg7: memref<64x32xf32, #tpu.memory_space<vmem>>) attributes {dimension_semantics = [], scalar_prefetch = 0 : i64, scratch_operands = 1 : i64, tpu.core_type = #tpu.core_type<tc>} {
    %c0 = arith.constant 0 : index
    %c0_0 = arith.constant 0 : index
    %0 = vector.load %arg1[%c0, %c0_0] : memref<4x128xf32, #tpu.memory_space<vmem>>, vector<4x128xf32>
    %c0_1 = arith.constant 0 : index
    %c0_2 = arith.constant 0 : index
    %1 = vector.load %arg2[%c0_1, %c0_2] : memref<32x128xf32, #tpu.memory_space<vmem>>, vector<32x128xf32>
    %c0_3 = arith.constant 0 : index
    %c0_4 = arith.constant 0 : index
    %2 = vector.load %arg3[%c0_3, %c0_4] : memref<1x128xf32, #tpu.memory_space<vmem>>, vector<1x128xf32>
    %c0_5 = arith.constant 0 : index
    %c0_6 = arith.constant 0 : index
    %3 = vector.load %arg0[%c0_5, %c0_6] : memref<64x4xf32, #tpu.memory_space<vmem>>, vector<64x4xf32>
    %cst = arith.constant dense<0.000000e+00> : vector<64x128xf32>
    %4 = tpu.matmul %3, %0, %cst {dimension_numbers = #tpu.dot_dimension_numbers<[1], [0], [0], [1], [0, 0, 1, 1], [], []>} : vector<64x4xf32>, vector<4x128xf32>, vector<64x128xf32> -> vector<64x128xf32>
    %5 = vector.broadcast %2 : vector<1x128xf32> to vector<64x128xf32>
    %6 = arith.addf %4, %5 : vector<64x128xf32>
    %cst_7 = arith.constant 0.000000e+00 : f32
    %7 = vector.broadcast %cst_7 : f32 to vector<8x32xf32>
    %cst_8 = arith.constant 0.000000e+00 : f32
    %8 = vector.broadcast %cst_8 : f32 to vector<8x32xf32>
    %9 = vector.extract_strided_slice %6 {offsets = [0, 0], sizes = [8, 128], strides = [1, 1]} : vector<64x128xf32> to vector<8x128xf32>
    %cst_9 = arith.constant dense<0.000000e+00> : vector<8x128xf32>
    %10 = tpu.matmul %7, %1, %cst_9 {dimension_numbers = #tpu.dot_dimension_numbers<[1], [0], [0], [1], [0, 0, 1, 1], [], []>} : vector<8x32xf32>, vector<32x128xf32>, vector<8x128xf32> -> vector<8x128xf32>
    %11 = arith.addf %9, %10 : vector<8x128xf32>
    %12 = arith.negf %11 : vector<8x128xf32>
    %13 = math.exp %12 : vector<8x128xf32>
    %cst_10 = arith.constant 1.000000e+00 : f32
    %14 = vector.broadcast %cst_10 : f32 to vector<8x128xf32>
    %15 = arith.addf %14, %13 : vector<8x128xf32>
    %16 = arith.divf %14, %15 : vector<8x128xf32>
    %17 = math.tanh %11 : vector<8x128xf32>
    %18 = vector.extract_strided_slice %16 {offsets = [0, 0], sizes = [8, 32], strides = [1, 1]} : vector<8x128xf32> to vector<8x32xf32>
    %19 = vector.extract_strided_slice %16 {offsets = [0, 32], sizes = [8, 32], strides = [1, 1]} : vector<8x128xf32> to vector<8x32xf32>
    %20 = vector.extract_strided_slice %17 {offsets = [0, 64], sizes = [8, 32], strides = [1, 1]} : vector<8x128xf32> to vector<8x32xf32>
    %21 = vector.extract_strided_slice %16 {offsets = [0, 96], sizes = [8, 32], strides = [1, 1]} : vector<8x128xf32> to vector<8x32xf32>
    %22 = arith.mulf %19, %8 : vector<8x32xf32>
    %23 = arith.mulf %18, %20 : vector<8x32xf32>
    %24 = arith.addf %22, %23 : vector<8x32xf32>
    %25 = math.tanh %24 : vector<8x32xf32>
    %26 = arith.mulf %21, %25 : vector<8x32xf32>
    %c0_11 = arith.constant 0 : index
    %c0_12 = arith.constant 0 : index
    %27 = vector.load %arg7[%c0_11, %c0_12] : memref<64x32xf32, #tpu.memory_space<vmem>>, vector<8x32xf32>
    tpu.vector_store %arg7[%c0_11, %c0_12], %26 {strides = array<i32>} : memref<64x32xf32, #tpu.memory_space<vmem>>, vector<8x32xf32>,
    %28 = vector.extract_strided_slice %6 {offsets = [8, 0], sizes = [8, 128], strides = [1, 1]} : vector<64x128xf32> to vector<8x128xf32>
    %cst_13 = arith.constant dense<0.000000e+00> : vector<8x128xf32>
    %29 = tpu.matmul %26, %1, %cst_13 {dimension_numbers = #tpu.dot_dimension_numbers<[1], [0], [0], [1], [0, 0, 1, 1], [], []>} : vector<8x32xf32>, vector<32x128xf32>, vector<8x128xf32> -> vector<8x128xf32>
    %30 = arith.addf %28, %29 : vector<8x128xf32>
    %31 = arith.negf %30 : vector<8x128xf32>
    %32 = math.exp %31 : vector<8x128xf32>
    %cst_14 = arith.constant 1.000000e+00 : f32
    %33 = vector.broadcast %cst_14 : f32 to vector<8x128xf32>
    %34 = arith.addf %33, %32 : vector<8x128xf32>
    %35 = arith.divf %33, %34 : vector<8x128xf32>
    %36 = math.tanh %30 : vector<8x128xf32>
    %37 = vector.extract_strided_slice %35 {offsets = [0, 0], sizes = [8, 32], strides = [1, 1]} : vector<8x128xf32> to vector<8x32xf32>
    %38 = vector.extract_strided_slice %35 {offsets = [0, 32], sizes = [8, 32], strides = [1, 1]} : vector<8x128xf32> to vector<8x32xf32>
    %39 = vector.extract_strided_slice %36 {offsets = [0, 64], sizes = [8, 32], strides = [1, 1]} : vector<8x128xf32> to vector<8x32xf32>
    %40 = vector.extract_strided_slice %35 {offsets = [0, 96], sizes = [8, 32], strides = [1, 1]} : vector<8x128xf32> to vector<8x32xf32>
    %41 = arith.mulf %38, %24 : vector<8x32xf32>
    %42 = arith.mulf %37, %39 : vector<8x32xf32>
    %43 = arith.addf %41, %42 : vector<8x32xf32>
    %44 = math.tanh %43 : vector<8x32xf32>
    %45 = arith.mulf %40, %44 : vector<8x32xf32>
    %c8 = arith.constant 8 : index
    %c0_15 = arith.constant 0 : index
    %46 = vector.load %arg7[%c8, %c0_15] : memref<64x32xf32, #tpu.memory_space<vmem>>, vector<8x32xf32>
    tpu.vector_store %arg7[%c8, %c0_15], %45 {strides = array<i32>} : memref<64x32xf32, #tpu.memory_space<vmem>>, vector<8x32xf32>,
    %47 = vector.extract_strided_slice %6 {offsets = [16, 0], sizes = [8, 128], strides = [1, 1]} : vector<64x128xf32> to vector<8x128xf32>
    %cst_16 = arith.constant dense<0.000000e+00> : vector<8x128xf32>
    %48 = tpu.matmul %45, %1, %cst_16 {dimension_numbers = #tpu.dot_dimension_numbers<[1], [0], [0], [1], [0, 0, 1, 1], [], []>} : vector<8x32xf32>, vector<32x128xf32>, vector<8x128xf32> -> vector<8x128xf32>
    %49 = arith.addf %47, %48 : vector<8x128xf32>
    %50 = arith.negf %49 : vector<8x128xf32>
    %51 = math.exp %50 : vector<8x128xf32>
    %cst_17 = arith.constant 1.000000e+00 : f32
    %52 = vector.broadcast %cst_17 : f32 to vector<8x128xf32>
    %53 = arith.addf %52, %51 : vector<8x128xf32>
    %54 = arith.divf %52, %53 : vector<8x128xf32>
    %55 = math.tanh %49 : vector<8x128xf32>
    %56 = vector.extract_strided_slice %54 {offsets = [0, 0], sizes = [8, 32], strides = [1, 1]} : vector<8x128xf32> to vector<8x32xf32>
    %57 = vector.extract_strided_slice %54 {offsets = [0, 32], sizes = [8, 32], strides = [1, 1]} : vector<8x128xf32> to vector<8x32xf32>
    %58 = vector.extract_strided_slice %55 {offsets = [0, 64], sizes = [8, 32], strides = [1, 1]} : vector<8x128xf32> to vector<8x32xf32>
    %59 = vector.extract_strided_slice %54 {offsets = [0, 96], sizes = [8, 32], strides = [1, 1]} : vector<8x128xf32> to vector<8x32xf32>
    %60 = arith.mulf %57, %43 : vector<8x32xf32>
    %61 = arith.mulf %56, %58 : vector<8x32xf32>
    %62 = arith.addf %60, %61 : vector<8x32xf32>
    %63 = math.tanh %62 : vector<8x32xf32>
    %64 = arith.mulf %59, %63 : vector<8x32xf32>
    %c16 = arith.constant 16 : index
    %c0_18 = arith.constant 0 : index
    %65 = vector.load %arg7[%c16, %c0_18] : memref<64x32xf32, #tpu.memory_space<vmem>>, vector<8x32xf32>
    tpu.vector_store %arg7[%c16, %c0_18], %64 {strides = array<i32>} : memref<64x32xf32, #tpu.memory_space<vmem>>, vector<8x32xf32>,
    %66 = vector.extract_strided_slice %6 {offsets = [24, 0], sizes = [8, 128], strides = [1, 1]} : vector<64x128xf32> to vector<8x128xf32>
    %cst_19 = arith.constant dense<0.000000e+00> : vector<8x128xf32>
    %67 = tpu.matmul %64, %1, %cst_19 {dimension_numbers = #tpu.dot_dimension_numbers<[1], [0], [0], [1], [0, 0, 1, 1], [], []>} : vector<8x32xf32>, vector<32x128xf32>, vector<8x128xf32> -> vector<8x128xf32>
    %68 = arith.addf %66, %67 : vector<8x128xf32>
    %69 = arith.negf %68 : vector<8x128xf32>
    %70 = math.exp %69 : vector<8x128xf32>
    %cst_20 = arith.constant 1.000000e+00 : f32
    %71 = vector.broadcast %cst_20 : f32 to vector<8x128xf32>
    %72 = arith.addf %71, %70 : vector<8x128xf32>
    %73 = arith.divf %71, %72 : vector<8x128xf32>
    %74 = math.tanh %68 : vector<8x128xf32>
    %75 = vector.extract_strided_slice %73 {offsets = [0, 0], sizes = [8, 32], strides = [1, 1]} : vector<8x128xf32> to vector<8x32xf32>
    %76 = vector.extract_strided_slice %73 {offsets = [0, 32], sizes = [8, 32], strides = [1, 1]} : vector<8x128xf32> to vector<8x32xf32>
    %77 = vector.extract_strided_slice %74 {offsets = [0, 64], sizes = [8, 32], strides = [1, 1]} : vector<8x128xf32> to vector<8x32xf32>
    %78 = vector.extract_strided_slice %73 {offsets = [0, 96], sizes = [8, 32], strides = [1, 1]} : vector<8x128xf32> to vector<8x32xf32>
    %79 = arith.mulf %76, %62 : vector<8x32xf32>
    %80 = arith.mulf %75, %77 : vector<8x32xf32>
    %81 = arith.addf %79, %80 : vector<8x32xf32>
    %82 = math.tanh %81 : vector<8x32xf32>
    %83 = arith.mulf %78, %82 : vector<8x32xf32>
    %c24 = arith.constant 24 : index
    %c0_21 = arith.constant 0 : index
    %84 = vector.load %arg7[%c24, %c0_21] : memref<64x32xf32, #tpu.memory_space<vmem>>, vector<8x32xf32>
    tpu.vector_store %arg7[%c24, %c0_21], %83 {strides = array<i32>} : memref<64x32xf32, #tpu.memory_space<vmem>>, vector<8x32xf32>,
    %85 = vector.extract_strided_slice %6 {offsets = [32, 0], sizes = [8, 128], strides = [1, 1]} : vector<64x128xf32> to vector<8x128xf32>
    %cst_22 = arith.constant dense<0.000000e+00> : vector<8x128xf32>
    %86 = tpu.matmul %83, %1, %cst_22 {dimension_numbers = #tpu.dot_dimension_numbers<[1], [0], [0], [1], [0, 0, 1, 1], [], []>} : vector<8x32xf32>, vector<32x128xf32>, vector<8x128xf32> -> vector<8x128xf32>
    %87 = arith.addf %85, %86 : vector<8x128xf32>
    %88 = arith.negf %87 : vector<8x128xf32>
    %89 = math.exp %88 : vector<8x128xf32>
    %cst_23 = arith.constant 1.000000e+00 : f32
    %90 = vector.broadcast %cst_23 : f32 to vector<8x128xf32>
    %91 = arith.addf %90, %89 : vector<8x128xf32>
    %92 = arith.divf %90, %91 : vector<8x128xf32>
    %93 = math.tanh %87 : vector<8x128xf32>
    %94 = vector.extract_strided_slice %92 {offsets = [0, 0], sizes = [8, 32], strides = [1, 1]} : vector<8x128xf32> to vector<8x32xf32>
    %95 = vector.extract_strided_slice %92 {offsets = [0, 32], sizes = [8, 32], strides = [1, 1]} : vector<8x128xf32> to vector<8x32xf32>
    %96 = vector.extract_strided_slice %93 {offsets = [0, 64], sizes = [8, 32], strides = [1, 1]} : vector<8x128xf32> to vector<8x32xf32>
    %97 = vector.extract_strided_slice %92 {offsets = [0, 96], sizes = [8, 32], strides = [1, 1]} : vector<8x128xf32> to vector<8x32xf32>
    %98 = arith.mulf %95, %81 : vector<8x32xf32>
    %99 = arith.mulf %94, %96 : vector<8x32xf32>
    %100 = arith.addf %98, %99 : vector<8x32xf32>
    %101 = math.tanh %100 : vector<8x32xf32>
    %102 = arith.mulf %97, %101 : vector<8x32xf32>
    %c32 = arith.constant 32 : index
    %c0_24 = arith.constant 0 : index
    %103 = vector.load %arg7[%c32, %c0_24] : memref<64x32xf32, #tpu.memory_space<vmem>>, vector<8x32xf32>
    tpu.vector_store %arg7[%c32, %c0_24], %102 {strides = array<i32>} : memref<64x32xf32, #tpu.memory_space<vmem>>, vector<8x32xf32>,
    %104 = vector.extract_strided_slice %6 {offsets = [40, 0], sizes = [8, 128], strides = [1, 1]} : vector<64x128xf32> to vector<8x128xf32>
    %cst_25 = arith.constant dense<0.000000e+00> : vector<8x128xf32>
    %105 = tpu.matmul %102, %1, %cst_25 {dimension_numbers = #tpu.dot_dimension_numbers<[1], [0], [0], [1], [0, 0, 1, 1], [], []>} : vector<8x32xf32>, vector<32x128xf32>, vector<8x128xf32> -> vector<8x128xf32>
    %106 = arith.addf %104, %105 : vector<8x128xf32>
    %107 = arith.negf %106 : vector<8x128xf32>
    %108 = math.exp %107 : vector<8x128xf32>
    %cst_26 = arith.constant 1.000000e+00 : f32
    %109 = vector.broadcast %cst_26 : f32 to vector<8x128xf32>
    %110 = arith.addf %109, %108 : vector<8x128xf32>
    %111 = arith.divf %109, %110 : vector<8x128xf32>
    %112 = math.tanh %106 : vector<8x128xf32>
    %113 = vector.extract_strided_slice %111 {offsets = [0, 0], sizes = [8, 32], strides = [1, 1]} : vector<8x128xf32> to vector<8x32xf32>
    %114 = vector.extract_strided_slice %111 {offsets = [0, 32], sizes = [8, 32], strides = [1, 1]} : vector<8x128xf32> to vector<8x32xf32>
    %115 = vector.extract_strided_slice %112 {offsets = [0, 64], sizes = [8, 32], strides = [1, 1]} : vector<8x128xf32> to vector<8x32xf32>
    %116 = vector.extract_strided_slice %111 {offsets = [0, 96], sizes = [8, 32], strides = [1, 1]} : vector<8x128xf32> to vector<8x32xf32>
    %117 = arith.mulf %114, %100 : vector<8x32xf32>
    %118 = arith.mulf %113, %115 : vector<8x32xf32>
    %119 = arith.addf %117, %118 : vector<8x32xf32>
    %120 = math.tanh %119 : vector<8x32xf32>
    %121 = arith.mulf %116, %120 : vector<8x32xf32>
    %c40 = arith.constant 40 : index
    %c0_27 = arith.constant 0 : index
    %122 = vector.load %arg7[%c40, %c0_27] : memref<64x32xf32, #tpu.memory_space<vmem>>, vector<8x32xf32>
    tpu.vector_store %arg7[%c40, %c0_27], %121 {strides = array<i32>} : memref<64x32xf32, #tpu.memory_space<vmem>>, vector<8x32xf32>,
    %123 = vector.extract_strided_slice %6 {offsets = [48, 0], sizes = [8, 128], strides = [1, 1]} : vector<64x128xf32> to vector<8x128xf32>
    %cst_28 = arith.constant dense<0.000000e+00> : vector<8x128xf32>
    %124 = tpu.matmul %121, %1, %cst_28 {dimension_numbers = #tpu.dot_dimension_numbers<[1], [0], [0], [1], [0, 0, 1, 1], [], []>} : vector<8x32xf32>, vector<32x128xf32>, vector<8x128xf32> -> vector<8x128xf32>
    %125 = arith.addf %123, %124 : vector<8x128xf32>
    %126 = arith.negf %125 : vector<8x128xf32>
    %127 = math.exp %126 : vector<8x128xf32>
    %cst_29 = arith.constant 1.000000e+00 : f32
    %128 = vector.broadcast %cst_29 : f32 to vector<8x128xf32>
    %129 = arith.addf %128, %127 : vector<8x128xf32>
    %130 = arith.divf %128, %129 : vector<8x128xf32>
    %131 = math.tanh %125 : vector<8x128xf32>
    %132 = vector.extract_strided_slice %130 {offsets = [0, 0], sizes = [8, 32], strides = [1, 1]} : vector<8x128xf32> to vector<8x32xf32>
    %133 = vector.extract_strided_slice %130 {offsets = [0, 32], sizes = [8, 32], strides = [1, 1]} : vector<8x128xf32> to vector<8x32xf32>
    %134 = vector.extract_strided_slice %131 {offsets = [0, 64], sizes = [8, 32], strides = [1, 1]} : vector<8x128xf32> to vector<8x32xf32>
    %135 = vector.extract_strided_slice %130 {offsets = [0, 96], sizes = [8, 32], strides = [1, 1]} : vector<8x128xf32> to vector<8x32xf32>
    %136 = arith.mulf %133, %119 : vector<8x32xf32>
    %137 = arith.mulf %132, %134 : vector<8x32xf32>
    %138 = arith.addf %136, %137 : vector<8x32xf32>
    %139 = math.tanh %138 : vector<8x32xf32>
    %140 = arith.mulf %135, %139 : vector<8x32xf32>
    %c48 = arith.constant 48 : index
    %c0_30 = arith.constant 0 : index
    %141 = vector.load %arg7[%c48, %c0_30] : memref<64x32xf32, #tpu.memory_space<vmem>>, vector<8x32xf32>
    tpu.vector_store %arg7[%c48, %c0_30], %140 {strides = array<i32>} : memref<64x32xf32, #tpu.memory_space<vmem>>, vector<8x32xf32>,
    %142 = vector.extract_strided_slice %6 {offsets = [56, 0], sizes = [8, 128], strides = [1, 1]} : vector<64x128xf32> to vector<8x128xf32>
    %cst_31 = arith.constant dense<0.000000e+00> : vector<8x128xf32>
    %143 = tpu.matmul %140, %1, %cst_31 {dimension_numbers = #tpu.dot_dimension_numbers<[1], [0], [0], [1], [0, 0, 1, 1], [], []>} : vector<8x32xf32>, vector<32x128xf32>, vector<8x128xf32> -> vector<8x128xf32>
    %144 = arith.addf %142, %143 : vector<8x128xf32>
    %145 = arith.negf %144 : vector<8x128xf32>
    %146 = math.exp %145 : vector<8x128xf32>
    %cst_32 = arith.constant 1.000000e+00 : f32
    %147 = vector.broadcast %cst_32 : f32 to vector<8x128xf32>
    %148 = arith.addf %147, %146 : vector<8x128xf32>
    %149 = arith.divf %147, %148 : vector<8x128xf32>
    %150 = math.tanh %144 : vector<8x128xf32>
    %151 = vector.extract_strided_slice %149 {offsets = [0, 0], sizes = [8, 32], strides = [1, 1]} : vector<8x128xf32> to vector<8x32xf32>
    %152 = vector.extract_strided_slice %149 {offsets = [0, 32], sizes = [8, 32], strides = [1, 1]} : vector<8x128xf32> to vector<8x32xf32>
    %153 = vector.extract_strided_slice %150 {offsets = [0, 64], sizes = [8, 32], strides = [1, 1]} : vector<8x128xf32> to vector<8x32xf32>
    %154 = vector.extract_strided_slice %149 {offsets = [0, 96], sizes = [8, 32], strides = [1, 1]} : vector<8x128xf32> to vector<8x32xf32>
    %155 = arith.mulf %152, %138 : vector<8x32xf32>
    %156 = arith.mulf %151, %153 : vector<8x32xf32>
    %157 = arith.addf %155, %156 : vector<8x32xf32>
    %158 = math.tanh %157 : vector<8x32xf32>
    %159 = arith.mulf %154, %158 : vector<8x32xf32>
    %c56 = arith.constant 56 : index
    %c0_33 = arith.constant 0 : index
    %160 = vector.load %arg7[%c56, %c0_33] : memref<64x32xf32, #tpu.memory_space<vmem>>, vector<8x32xf32>
    tpu.vector_store %arg7[%c56, %c0_33], %159 {strides = array<i32>} : memref<64x32xf32, #tpu.memory_space<vmem>>, vector<8x32xf32>,
    %c0_34 = arith.constant 0 : index
    %c0_35 = arith.constant 0 : index
    %161 = vector.load %arg7[%c0_34, %c0_35] : memref<64x32xf32, #tpu.memory_space<vmem>>, vector<64x32xf32>
    %c0_36 = arith.constant 0 : index
    %c0_37 = arith.constant 0 : index
    %162 = vector.load %arg4[%c0_36, %c0_37] : memref<32x128xf32, #tpu.memory_space<vmem>>, vector<32x128xf32>
    %cst_38 = arith.constant dense<0.000000e+00> : vector<64x128xf32>
    %163 = tpu.matmul %161, %162, %cst_38 {dimension_numbers = #tpu.dot_dimension_numbers<[1], [0], [0], [1], [0, 0, 1, 1], [], []>} : vector<64x32xf32>, vector<32x128xf32>, vector<64x128xf32> -> vector<64x128xf32>
    %c0_39 = arith.constant 0 : index
    %c0_40 = arith.constant 0 : index
    %164 = vector.load %arg5[%c0_39, %c0_40] : memref<1x128xf32, #tpu.memory_space<vmem>>, vector<1x128xf32>
    %165 = vector.broadcast %164 : vector<1x128xf32> to vector<64x128xf32>
    %166 = arith.addf %163, %165 : vector<64x128xf32>
    %167 = arith.negf %166 : vector<64x128xf32>
    %168 = math.exp %167 : vector<64x128xf32>
    %cst_41 = arith.constant 1.000000e+00 : f32
    %169 = vector.broadcast %cst_41 : f32 to vector<64x128xf32>
    %170 = arith.addf %169, %168 : vector<64x128xf32>
    %171 = arith.divf %169, %170 : vector<64x128xf32>
    %c0_42 = arith.constant 0 : index
    %c0_43 = arith.constant 0 : index
    %172 = vector.load %arg6[%c0_42, %c0_43] : memref<64x128xf32, #tpu.memory_space<vmem>>, vector<64x128xf32>
    tpu.vector_store %arg6[%c0_42, %c0_43], %171 {strides = array<i32>} : memref<64x128xf32, #tpu.memory_space<vmem>>, vector<64x128xf32>,
    return
  }
}

</mosaic_0001>

<bundles_post_ra>
// kernel: tpu_custom_call.1
= control target key start
LH: loop header
LB: loop body
LE: loop exit
PB: predicated region body
PF: predicated region fallthrough
CT: control target
= control target key end

     0   :  { %vm69_vm0 = vcmask 1043456   ;;  %vm44_vm1 = vcmask 31744   ;;  %v1627_v8 = vmov 0.0|0.0   ;;  %s1895_s0 = inlined_call_operand.vmem [shape: f32[64,4], index: 0, kind: input, shape index: {}]   ;;  %s1896_s1 = inlined_call_operand.vmem [shape: f32[4,128], index: 1, kind: input, shape index: {}]   ;;  %s1897_s2 = inlined_call_operand.vmem [shape: f32[32,128], index: 2, kind: input, shape index: {}]   ;;  %s1898_s3 = inlined_call_operand.vmem [shape: f32[1,128], index: 3, kind: input, shape index: {}]   ;;  %s1899_s4 = inlined_call_operand.vmem [shape: f32[32,128], index: 4, kind: input, shape index: {}]   ;;  %s1900_s5 = inlined_call_operand.vmem [shape: f32[1,128], index: 5, kind: input, shape index: {}]   ;;  %s1901_s6 = inlined_call_operand.hbm [shape: f32[64,128], index: 6, kind: output, shape index: {}]  }
   0x1   :  { %v24_v0 = vld [vmem:[%s1896_s1] sm:$0xf]  ;;  %v35_v2 = vld [vmem:[%s1895_s0 + $0x28] sm:$0xff]  ;;  %v36_v5 = vld [vmem:[%s1895_s0 + $0x30] sm:$0xff] }
   0x2   :  { %v34_v1 = vld [vmem:[%s1895_s0 + $0x20] sm:$0xff]  ;;  %1497 = vmatprep.subr.msk.mxu1 %vm69_vm0, %v24_v0  ;;  %v26_v4 = vld [vmem:[%s1897_s2 + $0x8] sm:$0xff]  ;;  %1319 = vmatprep.subr.msk.mxu0 %vm69_vm0, %v24_v0  ;;  %v27_v10 = vld [vmem:[%s1897_s2 + $0x10] sm:$0xff] }
   0x3   :  { %1327 = vmatprep.mubr.msk.f32.mxu1 %vm44_vm1, %v34_v1  ;;  %v25_v3 = vld [vmem:[%s1897_s2] sm:$0xff]  ;;  %1498 = vmatpush3.msk.msra.mxu1 %vm69_vm0, %v24_v0  ;;  %v31_v9 = vld [vmem:[%s1895_s0 + $0x8] sm:$0xff]  ;;  %v28_v11 = vld [vmem:[%s1897_s2 + $0x18] sm:$0xff] }
   0x4   :  { %v1691_v6 = vpack.c.bf16 %v26_v4, %v25_v3  ;;  %v30_v7 = vld [vmem:[%s1895_s0] sm:$0xff]  ;;  %1328 = vmatmul.mubr.msk.f32.vlgmr.msra.gmra.mrb[0].mxu1 %vm44_vm1, %v35_v2  ;;  %1441 = vmatprep.subr.bf16.mxu1 %v1627_v8  ;;  %v37_v12 = vld [vmem:[%s1895_s0 + $0x38] sm:$0xff]  ;;  %v1713_v13 = vpack.c.bf16 %v28_v11, %v27_v10 }
   0x5   :  { %1330 = vmatprep.mubr.msk.f32.mxu1 %vm44_vm1, %v36_v5 }
   0x6   :  { %1443 = vmatpush3.bf16.msra.mxu1 %v1691_v6 }
   0x7   :  { %11 = vsyncpa [#allocation4], 0  ;;  %1320 = vmatpush3.msk.msra.mxu0 %vm69_vm0, %v24_v0  ;;  %1321 = vmatprep.mubr.msk.f32.mxu0 %vm44_vm1, %v30_v7  ;;  %vm1628_vm2 = vmmov 0   ;;  %v1629_v14 = vmov 0.0   ;;  %v1743_v18 = vld [vmem:[%s1898_s3] ss:$0 sm:$0xff] }
   0x8   :  { %1444 = vmatprep.subr.bf16.mxu1 %v1627_v8  ;;  %1322 = vmatmul.mubr.msk.f32.vlgmr.msra.gmra.mrb[0].mxu0 %vm44_vm1, %v31_v9  ;;  %s1630_s19 = smov 64   ;;  %s1631_s3 = smov 32   ;;  %vm178_vm3 = vcmask 261120   ;;  %v32_v54 = vld [vmem:[%s1895_s0 + $0x10] sm:$0xff]  ;;  %v33_v55 = vld [vmem:[%s1895_s0 + $0x18] sm:$0xff] }
   0x9   :  { %1331 = vmatmul.mubr.msk.f32.gmra.mrb[2].mxu1 %vm44_vm1, %v37_v12  ;;  %1453 = vmatprep.subr.bf16.mxu0 %v1627_v8 }
   0xa   :  { %1446 = vmatpush3.bf16.msra.mxu1 %v1713_v13  ;;  %1341 = vmatprep.mubr.msk.f32.mxu1 %vm1628_vm2, %v1629_v14 }
   0xb   :  { %1447 = vmatprep.subr.bf16.mxu1 %v1627_v8  ;;  %1455 = vmatpush3.bf16.msra.mxu0 %v1691_v6 }
   0xc   :  { %1456 = vmatprep.subr.bf16.mxu0 %v1627_v8  ;;  %1324 = vmatprep.mubr.msk.f32.mxu0 %vm44_vm1, %v32_v54 }
   0xd   :  { %1342 = vmatmul.mubr.f32.vlgmr.msra.gmra.mrb[4].mxu1 %v1629_v14  ;;  %1325 = vmatmul.mubr.msk.f32.gmra.mrb[2].mxu0 %vm44_vm1, %v33_v55 }
   0xe   :  { %1449 = vmatpush3.bf16.msra.mxu1 %v1691_v6  ;;  %1352 = vmatprep.mubr.msk.f32.mxu1 %vm1628_vm2, %v1629_v14 }
   0xf   :  { %1450 = vmatprep.subr.bf16.mxu1 %v1627_v8  ;;  %1458 = vmatpush3.bf16.msra.mxu0 %v1713_v13 }
  0x10   :  { %1465 = vmatprep.subr.bf16.mxu0 %v1627_v8  ;;  %1363 = vmatprep.mubr.msk.f32.mxu0 %vm1628_vm2, %v1629_v14 }
  0x12   :  { %1452 = vmatpush3.bf16.msra.mxu1 %v1713_v13 }
  0x13   :  { %1459 = vmatprep.subr.bf16.mxu1 %v1627_v8 }
  0xd7   :  { %v1736_v15 = vpop.f32.mrb[0].mxu1 }
  0xd8   :  { %v1738_v16 = vpop.f32.mrb[1].mxu1 }
  0xdb   :  { %v1323_v17 = vpop.f32.mrb[0].mxu0 }
  0xdc   :  { %v1745_v19 = vpop.f32.mrb[2].mxu1  ;;  %v139_v20 = vpop.f32.mrb[1].mxu0  ;;  %v145_v40 = vadd.f32 %v1323_v17, %v1743_v18 }
  0xdd   :  { %v1747_v21 = vpop.f32.mrb[3].mxu1  ;;  %v140_v22 = vadd.f32 %v1743_v18, %v139_v20 }
  0xe0   :  { %v248_v23 = vpop.f32.mrb[4].mxu1  ;;  %v1326_v59 = vpop.f32.mrb[2].mxu0 }
  0xe1   :  { %v252_v24 = vadd.f32 %v248_v23, %v140_v22  ;;  %v1343_v25 = vpop.f32.mrb[5].mxu1  ;;  %v149_v60 = vpop.f32.mrb[3].mxu0 }
  0xe2   :  { %v150_v62 = vadd.f32 %v1743_v18, %v149_v60  ;;  %v155_v25 = vadd.f32 %v1326_v59, %v1743_v18  ;;  %v165_v60 = vadd.f32 %v1736_v15, %v1743_v18 }
  0xe3   :  { %1507 = vtanh.f32 %v252_v24  ;;  %v1226_v27 = vmul.f32 -1.442695, %v252_v24 }
  0xe5   :  { %1509 = vpow2.f32 %v1226_v27 }
  0xed   :  { %v1508_v26 = vpop.eup %1507 }
  0xee   :  { %262 = vrot.lane.b32.xlu0 %v1508_v26, %s1630_s19 }
  0xef   :  { %v1510_v28 = vpop.eup %1509 }
  0xf0   :  { %v256_v29 = vadd.f32 1.0, %v1510_v28 }
  0xf2   :  { %1511 = vrcp.f32 %v256_v29 }
  0xfc   :  { %v1512_v30 = vpop.eup %1511 }
  0xfd   :  { %v260_v33 = vmul.f32 0.0, %v1512_v30 }
 0x160   :  { %v263_v31 = vpop.permute.xlu0 %262 }
 0x161   :  { %v265_v32 = vmul.f32 %v1512_v30, %v263_v31 }
 0x163   :  { %267 = vrot.lane.b32.xlu0 %v265_v32, %s1631_s3 }
 0x1d5   :  { %v268_v34 = vpop.permute.xlu0 %267 }
 0x1d6   :  { %v270_v35 = vadd.f32 %v268_v34, %v260_v33 }
 0x1d8   :  { %1513 = vtanh.f32 %v270_v35 }
 0x1e2   :  { %v1514_v36 = vpop.eup %1513 }
 0x1e3   :  { %273 = vrot.lane.b32.xlu1 %v1514_v36, %s1630_s19 }
 0x255   :  { %v274_v37 = vpop.permute.xlu1 %273 }
 0x256   :  { %v276_v38 = vmul.f32 %v1512_v30, %v274_v37 }
 0x258   :  { %278 = vrot.lane.b32.xlu1 %v276_v38, %s1631_s3 }
 0x2ca   :  { %v279_v39 = vpop.permute.xlu1 %278 }
 0x2cb   :  { %281 = vst.msk [vmem:[#allocation2] sm:$0xff] %vm178_vm3, %v279_v39  ;;  %1353 = vmatmul.mubr.msk.f32.vlgmr.msra.gmra.mrb[6].mxu1 %vm178_vm3, %v279_v39 }
 0x2cc   :  { %1461 = vmatpush3.bf16.msra.mxu1 %v1691_v6  ;;  %1374 = vmatprep.mubr.msk.f32.mxu1 %vm1628_vm2, %v1629_v14 }
 0x2cd   :  { %1462 = vmatprep.subr.bf16.mxu1 %v1627_v8 }
 0x2d0   :  { %1464 = vmatpush3.bf16.msra.mxu1 %v1713_v13 }
 0x2d1   :  { %1471 = vmatprep.subr.bf16.mxu1 %v1627_v8 }
 0x39e   :  { %v350_v41 = vpop.f32.mrb[6].mxu1 }
 0x39f   :  { %v354_v42 = vadd.f32 %v350_v41, %v145_v40  ;;  %v1354_v43 = vpop.f32.mrb[7].mxu1 }
 0x3a0   :  { %v160_v43 = vadd.f32 %v1743_v18, %v1738_v16 }
 0x3a1   :  { %1515 = vtanh.f32 %v354_v42  ;;  %v1228_v45 = vmul.f32 -1.442695, %v354_v42 }
 0x3a3   :  { %1517 = vpow2.f32 %v1228_v45 }
 0x3ab   :  { %v1516_v44 = vpop.eup %1515 }
 0x3ac   :  { %364 = vrot.lane.b32.xlu0 %v1516_v44, %s1630_s19 }
 0x3ad   :  { %v1518_v46 = vpop.eup %1517 }
 0x3ae   :  { %v358_v47 = vadd.f32 1.0, %v1518_v46 }
 0x3b0   :  { %1519 = vrcp.f32 %v358_v47 }
 0x3ba   :  { %v1520_v48 = vpop.eup %1519 }
 0x3bb   :  { %v362_v51 = vmul.f32 %v1520_v48, %v270_v35 }
 0x41e   :  { %v365_v49 = vpop.permute.xlu0 %364 }
 0x41f   :  { %v367_v50 = vmul.f32 %v1520_v48, %v365_v49 }
 0x421   :  { %369 = vrot.lane.b32.xlu1 %v367_v50, %s1631_s3 }
 0x493   :  { %v370_v52 = vpop.permute.xlu1 %369 }
 0x494   :  { %v372_v53 = vadd.f32 %v370_v52, %v362_v51 }
 0x496   :  { %1521 = vtanh.f32 %v372_v53 }
 0x4a0   :  { %v1522_v56 = vpop.eup %1521 }
 0x4a1   :  { %375 = vrot.lane.b32.xlu0 %v1522_v56, %s1630_s19 }
 0x513   :  { %v376_v57 = vpop.permute.xlu0 %375 }
 0x514   :  { %v378_v58 = vmul.f32 %v1520_v48, %v376_v57 }
 0x516   :  { %380 = vrot.lane.b32.xlu1 %v378_v58, %s1631_s3 }
 0x588   :  { %v381_v61 = vpop.permute.xlu1 %380 }
 0x589   :  { %383 = vst.msk [vmem:[#allocation2 + $0x8] sm:$0xff] %vm178_vm3, %v381_v61  ;;  %1364 = vmatmul.mubr.msk.f32.vlgmr.msra.gmra.mrb[4].mxu0 %vm178_vm3, %v381_v61 }
 0x58a   :  { %1467 = vmatpush3.bf16.msra.mxu0 %v1691_v6  ;;  %1385 = vmatprep.mubr.msk.f32.mxu0 %vm1628_vm2, %v1629_v14 }
 0x58b   :  { %1468 = vmatprep.subr.bf16.mxu0 %v1627_v8 }
 0x58e   :  { %1470 = vmatpush3.bf16.msra.mxu0 %v1713_v13 }
 0x58f   :  { %1477 = vmatprep.subr.bf16.mxu0 %v1627_v8 }
 0x65c   :  { %v452_v63 = vpop.f32.mrb[4].mxu0 }
 0x65d   :  { %v456_v0 = vadd.f32 %v452_v63, %v150_v62  ;;  %v1365_v1 = vpop.f32.mrb[5].mxu0 }
 0x65f   :  { %1523 = vtanh.f32 %v456_v0  ;;  %v1230_v3 = vmul.f32 -1.442695, %v456_v0 }
 0x661   :  { %1525 = vpow2.f32 %v1230_v3 }
 0x669   :  { %v1524_v2 = vpop.eup %1523 }
 0x66a   :  { %466 = vrot.lane.b32.xlu0 %v1524_v2, %s1630_s19 }
 0x66b   :  { %v1526_v4 = vpop.eup %1525 }
 0x66c   :  { %v460_v5 = vadd.f32 1.0, %v1526_v4 }
 0x66e   :  { %1527 = vrcp.f32 %v460_v5  ;;  %v1004_v5 = vld [vmem:[%s1899_s4] sm:$0xff] }
 0x678   :  { %v1528_v7 = vpop.eup %1527 }
 0x679   :  { %v464_v11 = vmul.f32 %v1528_v7, %v372_v53 }
 0x6dc   :  { %v467_v9 = vpop.permute.xlu0 %466 }
 0x6dd   :  { %v469_v10 = vmul.f32 %v1528_v7, %v467_v9 }
 0x6df   :  { %471 = vrot.lane.b32.xlu1 %v469_v10, %s1631_s3 }
 0x751   :  { %v472_v12 = vpop.permute.xlu1 %471 }
 0x752   :  { %v474_v17 = vadd.f32 %v472_v12, %v464_v11 }
 0x754   :  { %1529 = vtanh.f32 %v474_v17 }
 0x75e   :  { %v1530_v20 = vpop.eup %1529 }
 0x75f   :  { %477 = vrot.lane.b32.xlu0 %v1530_v20, %s1630_s19  ;;  %v1007_v20 = vld [vmem:[%s1899_s4 + $0x18] sm:$0xff] }
 0x7d1   :  { %v478_v22 = vpop.permute.xlu0 %477 }
 0x7d2   :  { %v480_v23 = vmul.f32 %v1528_v7, %v478_v22  ;;  %v1005_v7 = vld [vmem:[%s1899_s4 + $0x8] sm:$0xff] }
 0x7d3   :  { %v1489_v9 = vpack.c.bf16 %v1005_v7, %v1004_v5 }
 0x7d4   :  { %482 = vrot.lane.b32.xlu1 %v480_v23, %s1631_s3 }
 0x846   :  { %v483_v24 = vpop.permute.xlu1 %482 }
 0x847   :  { %485 = vst.msk [vmem:[#allocation2 + $0x10] sm:$0xff] %vm178_vm3, %v483_v24  ;;  %1375 = vmatmul.mubr.msk.f32.vlgmr.msra.gmra.mrb[8].mxu1 %vm178_vm3, %v483_v24  ;;  %v996_v24 = vld [vmem:[#allocation2] sm:$0xff] }
 0x848   :  { %1473 = vmatpush3.bf16.msra.mxu1 %v1691_v6  ;;  %1396 = vmatprep.mubr.msk.f32.mxu1 %vm1628_vm2, %v1629_v14 }
 0x849   :  { %1474 = vmatprep.subr.bf16.mxu1 %v1627_v8 }
 0x84c   :  { %1476 = vmatpush3.bf16.msra.mxu1 %v1713_v13 }
 0x84d   :  { %1483 = vmatprep.subr.bf16.mxu1 %v1627_v8 }
 0x91a   :  { %v554_v26 = vpop.f32.mrb[8].mxu1 }
 0x91b   :  { %v558_v27 = vadd.f32 %v554_v26, %v155_v25  ;;  %v1376_v28 = vpop.f32.mrb[9].mxu1  ;;  %v997_v25 = vld [vmem:[#allocation2 + $0x8] sm:$0xff]  ;;  %v998_v26 = vld [vmem:[#allocation2 + $0x10] sm:$0xff] }
 0x91d   :  { %1531 = vtanh.f32 %v558_v27  ;;  %v1232_v30 = vmul.f32 -1.442695, %v558_v27 }
 0x91f   :  { %1533 = vpow2.f32 %v1232_v30  ;;  %v170_v30 = vadd.f32 %v1743_v18, %v1747_v21 }
 0x927   :  { %v1532_v29 = vpop.eup %1531 }
 0x928   :  { %568 = vrot.lane.b32.xlu0 %v1532_v29, %s1630_s19 }
 0x929   :  { %v1534_v31 = vpop.eup %1533 }
 0x92a   :  { %v562_v32 = vadd.f32 1.0, %v1534_v31 }
 0x92c   :  { %1535 = vrcp.f32 %v562_v32 }
 0x936   :  { %v1536_v33 = vpop.eup %1535 }
 0x937   :  { %v566_v36 = vmul.f32 %v1536_v33, %v474_v17  ;;  %v1006_v17 = vld [vmem:[%s1899_s4 + $0x10] sm:$0xff] }
 0x938   :  { %v1493_v22 = vpack.c.bf16 %v1007_v20, %v1006_v17 }
 0x99a   :  { %v569_v34 = vpop.permute.xlu0 %568 }
 0x99b   :  { %v571_v35 = vmul.f32 %v1536_v33, %v569_v34  ;;  %v1857_v34 = vld [vmem:[%s1900_s5] ss:$0 sm:$0xff]  ;;  %s1632_s5 = smov [#allocation3]  }
 0x99c   :  { %s1205_s7 = sshll.u32 %s1632_s5, 4  ;;  %s1206_s7 = int_to_ptr.vmem [resolvable:$true] %s1205_s7 }
 0x99d   :  { %573 = vrot.lane.b32.xlu1 %v571_v35, %s1631_s3  ;;  %s1603_s8 = scalar_lea.vmem %s1206_s7, 1024  ;;  %p1608_p1 = scmp.lt.s32.totalorder %s1206_s7, %s1206_s7 }
 0x99e   :  { %p1604_p0 = scmp.ne.s32.totalorder %s1206_s7, %s1603_s8  ;;  %p1609_p2 = scmp.lt.s32.totalorder %s1603_s8, %s1603_s8 }
 0x9a0   :  { %p1610_p3 = por %p1609_p2, %p1608_p1 }
 0x9a2   :  { %p1611_p4 = pnand %p1610_p3, %p1604_p0 }
 0xa0f   :  { %v574_v37 = vpop.permute.xlu1 %573 }
 0xa10   :  { %v576_v38 = vadd.f32 %v574_v37, %v566_v36 }
 0xa12   :  { %1537 = vtanh.f32 %v576_v38 }
 0xa1c   :  { %v1538_v39 = vpop.eup %1537 }
 0xa1d   :  { %579 = vrot.lane.b32.xlu0 %v1538_v39, %s1630_s19 }
 0xa8f   :  { %v580_v40 = vpop.permute.xlu0 %579 }
 0xa90   :  { %v582_v41 = vmul.f32 %v1536_v33, %v580_v40 }
 0xa92   :  { %584 = vrot.lane.b32.xlu1 %v582_v41, %s1631_s3 }
 0xb04   :  { %v585_v42 = vpop.permute.xlu1 %584 }
 0xb05   :  { %587 = vst.msk [vmem:[#allocation2 + $0x18] sm:$0xff] %vm178_vm3, %v585_v42  ;;  %1386 = vmatmul.mubr.msk.f32.vlgmr.msra.gmra.mrb[6].mxu0 %vm178_vm3, %v585_v42 }
 0xb06   :  { %1479 = vmatpush3.bf16.msra.mxu0 %v1691_v6  ;;  %1407 = vmatprep.mubr.msk.f32.mxu0 %vm1628_vm2, %v1629_v14 }
 0xb07   :  { %1480 = vmatprep.subr.bf16.mxu0 %v1627_v8 }
 0xb0a   :  { %1482 = vmatpush3.bf16.msra.mxu0 %v1713_v13 }
 0xb0b   :  { %1490 = vmatprep.subr.bf16.mxu0 %v1489_v9 }
 0xb0c   :  { %v999_v27 = vld [vmem:[#allocation2 + $0x18] sm:$0xff] }
 0xbd8   :  { %v656_v44 = vpop.f32.mrb[6].mxu0 }
 0xbd9   :  { %v660_v45 = vadd.f32 %v656_v44, %v160_v43  ;;  %v1387_v46 = vpop.f32.mrb[7].mxu0 }
 0xbdb   :  { %1539 = vtanh.f32 %v660_v45  ;;  %v1234_v48 = vmul.f32 -1.442695, %v660_v45 }
 0xbdd   :  { %1541 = vpow2.f32 %v1234_v48 }
 0xbe5   :  { %v1540_v47 = vpop.eup %1539 }
 0xbe6   :  { %670 = vrot.lane.b32.xlu0 %v1540_v47, %s1630_s19 }
 0xbe7   :  { %v1542_v49 = vpop.eup %1541 }
 0xbe8   :  { %v664_v50 = vadd.f32 1.0, %v1542_v49 }
 0xbea   :  { %1543 = vrcp.f32 %v664_v50 }
 0xbf4   :  { %v1544_v51 = vpop.eup %1543 }
 0xbf5   :  { %v668_v54 = vmul.f32 %v1544_v51, %v576_v38 }
 0xc58   :  { %v671_v52 = vpop.permute.xlu0 %670 }
 0xc59   :  { %v673_v53 = vmul.f32 %v1544_v51, %v671_v52 }
 0xc5b   :  { %675 = vrot.lane.b32.xlu1 %v673_v53, %s1631_s3 }
 0xccd   :  { %v676_v55 = vpop.permute.xlu1 %675 }
 0xcce   :  { %v678_v16 = vadd.f32 %v676_v55, %v668_v54 }
 0xcd0   :  { %1545 = vtanh.f32 %v678_v16 }
 0xcda   :  { %v1546_v56 = vpop.eup %1545 }
 0xcdb   :  { %681 = vrot.lane.b32.xlu0 %v1546_v56, %s1630_s19 }
 0xd4d   :  { %v682_v57 = vpop.permute.xlu0 %681 }
 0xd4e   :  { %v684_v58 = vmul.f32 %v1544_v51, %v682_v57 }
 0xd50   :  { %686 = vrot.lane.b32.xlu1 %v684_v58, %s1631_s3 }
 0xdc2   :  { %v687_v59 = vpop.permute.xlu1 %686 }
 0xdc3   :  { %689 = vst.msk [vmem:[#allocation2 + $0x20] sm:$0xff] %vm178_vm3, %v687_v59  ;;  %1397 = vmatmul.mubr.msk.f32.vlgmr.msra.gmra.mrb[10].mxu1 %vm178_vm3, %v687_v59 }
 0xdc4   :  { %1485 = vmatpush3.bf16.msra.mxu1 %v1691_v6  ;;  %1418 = vmatprep.mubr.msk.f32.mxu1 %vm1628_vm2, %v1629_v14 }
 0xdc5   :  { %1486 = vmatprep.subr.bf16.mxu1 %v1627_v8 }
 0xdc8   :  { %1488 = vmatpush3.bf16.msra.mxu1 %v1713_v13 }
 0xdca   :  { %v1000_v28 = vld [vmem:[#allocation2 + $0x20] sm:$0xff] }
 0xe96   :  { %v758_v61 = vpop.f32.mrb[10].mxu1 }
 0xe97   :  { %v762_v62 = vadd.f32 %v758_v61, %v165_v60  ;;  %v1398_v63 = vpop.f32.mrb[11].mxu1 }
 0xe99   :  { %1547 = vtanh.f32 %v762_v62  ;;  %v1236_v1 = vmul.f32 -1.442695, %v762_v62 }
 0xe9b   :  { %1549 = vpow2.f32 %v1236_v1 }
 0xea3   :  { %v1548_v0 = vpop.eup %1547 }
 0xea4   :  { %772 = vrot.lane.b32.xlu0 %v1548_v0, %s1630_s19 }
 0xea5   :  { %v1550_v6 = vpop.eup %1549 }
 0xea6   :  { %v766_v2 = vadd.f32 1.0, %v1550_v6 }
 0xea8   :  { %1551 = vrcp.f32 %v766_v2 }
 0xeb2   :  { %v1552_v14 = vpop.eup %1551 }
 0xeb3   :  { %v770_v13 = vmul.f32 %v1552_v14, %v678_v16 }
 0xf16   :  { %v773_v3 = vpop.permute.xlu0 %772 }
 0xf17   :  { %v775_v8 = vmul.f32 %v1552_v14, %v773_v3 }
 0xf19   :  { %777 = vrot.lane.b32.xlu1 %v775_v8, %s1631_s3 }
 0xf8b   :  { %v778_v4 = vpop.permute.xlu1 %777 }
 0xf8c   :  { %v1827_v15 = vadd.f32 %v778_v4, %v770_v13 }
 0xf8e   :  { %1553 = vtanh.f32 %v1827_v15 }
 0xf98   :  { %v1554_v10 = vpop.eup %1553 }
 0xf99   :  { %783 = vrot.lane.b32.xlu0 %v1554_v10, %s1630_s19 }
0x100b   :  { %v784_v11 = vpop.permute.xlu0 %783 }
0x100c   :  { %v786_v12 = vmul.f32 %v1552_v14, %v784_v11 }
0x100e   :  { %788 = vrot.lane.b32.xlu1 %v786_v12, %s1631_s3 }
0x1080   :  { %v789_v23 = vpop.permute.xlu1 %788 }
0x1081   :  { %791 = vst.msk [vmem:[#allocation2 + $0x28] sm:$0xff] %vm178_vm3, %v789_v23  ;;  %1408 = vmatmul.mubr.msk.f32.vlgmr.msra.gmra.mrb[8].mxu0 %vm178_vm3, %v789_v23 }
0x1082   :  { %1492 = vmatpush3.bf16.msra.mxu0 %v1489_v9  ;;  %1429 = vmatprep.mubr.msk.f32.mxu0 %vm178_vm3, %v996_v24 }
0x1083   :  { %1494 = vmatprep.subr.bf16.mxu0 %v1493_v22 }
0x1086   :  { %1496 = vmatpush3.bf16.msra.mxu0 %v1493_v22 }
0x1088   :  { %v1001_v29 = vld [vmem:[#allocation2 + $0x28] sm:$0xff] }
0x1089   :  { %1430 = vmatmul.mubr.msk.f32.vlgmr.msra.gmra.mrb[10].mxu0 %vm178_vm3, %v997_v25 }
0x108a   :  { %1432 = vmatprep.mubr.msk.f32.mxu0 %vm178_vm3, %v998_v26 }
0x108d   :  { %1433 = vmatmul.mubr.msk.f32.gmra.mrb[12].mxu0 %vm178_vm3, %v999_v27 }
0x108e   :  { %1435 = vmatprep.mubr.msk.f32.mxu0 %vm178_vm3, %v1000_v28 }
0x1091   :  { %1436 = vmatmul.mubr.msk.f32.gmra.mrb[14].mxu0 %vm178_vm3, %v1001_v29 }
0x1154   :  { %v860_v31 = vpop.f32.mrb[8].mxu0 }
0x1155   :  { %v864_v32 = vadd.f32 %v860_v31, %v170_v30  ;;  %v1409_v33 = vpop.f32.mrb[9].mxu0 }
0x1157   :  { %1555 = vtanh.f32 %v864_v32  ;;  %v1238_v8 = vmul.f32 -1.442695, %v864_v32 }
0x115c   :  { %v1431_v35 = vpop.f32.mrb[10].mxu0 }
0x115d   :  { %v1111_v36 = vadd.f32 %v1431_v35, %v1857_v34  ;;  %v1105_v37 = vpop.f32.mrb[11].mxu0 }
0x115e   :  { %v1106_v38 = vadd.f32 %v1857_v34, %v1105_v37 }
0x115f   :  { %v1251_v39 = vmul.f32 -1.442695, %v1111_v36 }
0x1160   :  { %v1250_v40 = vmul.f32 -1.442695, %v1106_v38  ;;  %v1434_v41 = vpop.f32.mrb[12].mxu0 }
0x1161   :  { %v1556_v42 = vpop.eup %1555  ;;  %1557 = vpow2.f32 %v1251_v39  ;;  %v1121_v21 = vadd.f32 %v1434_v41, %v1857_v34  ;;  %v1115_v43 = vpop.f32.mrb[13].mxu0 }
0x1162   :  { %1559 = vpow2.f32 %v1250_v40  ;;  %v1116_v44 = vadd.f32 %v1857_v34, %v1115_v43  ;;  %874 = vrot.lane.b32.xlu0 %v1556_v42, %s1630_s19 }
0x1163   :  { %v1253_v45 = vmul.f32 -1.442695, %v1121_v21 }
0x1164   :  { %v1252_v46 = vmul.f32 -1.442695, %v1116_v44  ;;  %v1437_v47 = vpop.f32.mrb[14].mxu0 }
0x1165   :  { %1561 = vpow2.f32 %v1253_v45  ;;  %v1131_v48 = vadd.f32 %v1437_v47, %v1857_v34  ;;  %v1125_v49 = vpop.f32.mrb[15].mxu0 }
0x1166   :  { %v1126_v50 = vadd.f32 %v1857_v34, %v1125_v49  ;;  %1563 = vpow2.f32 %v1252_v46 }
0x1167   :  { %v1255_v51 = vmul.f32 -1.442695, %v1131_v48 }
0x1168   :  { %v1254_v52 = vmul.f32 -1.442695, %v1126_v50 }
0x1169   :  { %1565 = vpow2.f32 %v1255_v51 }
0x116a   :  { %1567 = vpow2.f32 %v1254_v52 }
0x116b   :  { %v1558_v53 = vpop.eup %1557 }
0x116c   :  { %v1560_v54 = vpop.eup %1559  ;;  %v1169_v55 = vadd.f32 1.0, %v1558_v53 }
0x116d   :  { %v1168_v16 = vadd.f32 1.0, %v1560_v54 }
0x116e   :  { %1569 = vrcp.f32 %v1169_v55 }
0x116f   :  { %v1562_v56 = vpop.eup %1561  ;;  %1571 = vrcp.f32 %v1168_v16 }
0x1170   :  { %v1171_v57 = vadd.f32 1.0, %v1562_v56  ;;  %v1564_v58 = vpop.eup %1563 }
0x1171   :  { %v1170_v59 = vadd.f32 1.0, %v1564_v58 }
0x1172   :  { %1573 = vrcp.f32 %v1171_v57 }
0x1173   :  { %v1566_v60 = vpop.eup %1565  ;;  %1575 = vrcp.f32 %v1170_v59 }
0x1174   :  { %v1568_v61 = vpop.eup %1567  ;;  %v1173_v62 = vadd.f32 1.0, %v1566_v60 }
0x1175   :  { %v1172_v63 = vadd.f32 1.0, %v1568_v61 }
0x1176   :  { %1577 = vrcp.f32 %v1173_v62 }
0x1177   :  { %1579 = vrcp.f32 %v1172_v63 }
0x1178   :  { %v1570_v0 = vpop.eup %1569  ;;  %1581 = vpow2.f32 %v1238_v8 }
0x1179   :  { %v1572_v1 = vpop.eup %1571  ;;  %1193 = vst [vmem:[#allocation3 + $0x8] sm:$0xff] %v1570_v0 }
0x117a   :  { %1192 = vst [vmem:[#allocation3] sm:$0xff] %v1572_v1 }
0x117c   :  { %v1574_v6 = vpop.eup %1573 }
0x117d   :  { %1195 = vst [vmem:[#allocation3 + $0x18] sm:$0xff] %v1574_v6  ;;  %v1576_v2 = vpop.eup %1575 }
0x117e   :  { %1194 = vst [vmem:[#allocation3 + $0x10] sm:$0xff] %v1576_v2 }
0x1180   :  { %v1578_v14 = vpop.eup %1577 }
0x1181   :  { %v1580_v3 = vpop.eup %1579  ;;  %1197 = vst [vmem:[#allocation3 + $0x28] sm:$0xff] %v1578_v14 }
0x1182   :  { %1196 = vst [vmem:[#allocation3 + $0x20] sm:$0xff] %v1580_v3  ;;  %v1582_v13 = vpop.eup %1581 }
0x1183   :  { %v868_v4 = vadd.f32 1.0, %v1582_v13 }
0x1185   :  { %1583 = vrcp.f32 %v868_v4 }
0x118f   :  { %v1584_v5 = vpop.eup %1583 }
0x1190   :  { %v872_v10 = vmul.f32 %v1584_v5, %v1827_v15  ;;  %v175_v15 = vadd.f32 %v1745_v19, %v1743_v18 }
0x11d4   :  { %v875_v7 = vpop.permute.xlu0 %874 }
0x11d5   :  { %v877_v9 = vmul.f32 %v1584_v5, %v875_v7 }
0x11d7   :  { %879 = vrot.lane.b32.xlu1 %v877_v9, %s1631_s3 }
0x1249   :  { %v880_v11 = vpop.permute.xlu1 %879 }
0x124a   :  { %v882_v12 = vadd.f32 %v880_v11, %v872_v10 }
0x124c   :  { %1585 = vtanh.f32 %v882_v12 }
0x1256   :  { %v1586_v17 = vpop.eup %1585 }
0x1257   :  { %885 = vrot.lane.b32.xlu0 %v1586_v17, %s1630_s19 }
0x12c9   :  { %v886_v20 = vpop.permute.xlu0 %885 }
0x12ca   :  { %v888_v22 = vmul.f32 %v1584_v5, %v886_v20 }
0x12cc   :  { %890 = vrot.lane.b32.xlu1 %v888_v22, %s1631_s3 }
0x133e   :  { %v891_v23 = vpop.permute.xlu1 %890 }
0x133f   :  { %893 = vst.msk [vmem:[#allocation2 + $0x30] sm:$0xff] %vm178_vm3, %v891_v23  ;;  %1419 = vmatmul.mubr.msk.f32.vlgmr.msra.gmra.mrb[12].mxu1 %vm178_vm3, %v891_v23 }
0x1346   :  { %v1002_v24 = vld [vmem:[#allocation2 + $0x30] sm:$0xff] }
0x1347   :  { %1438 = vmatprep.mubr.msk.f32.mxu0 %vm178_vm3, %v1002_v24 }
0x1412   :  { %v962_v25 = vpop.f32.mrb[12].mxu1 }
0x1413   :  { %v966_v26 = vadd.f32 %v962_v25, %v175_v15  ;;  %v1420_v27 = vpop.f32.mrb[13].mxu1 }
0x1415   :  { %1587 = vtanh.f32 %v966_v26  ;;  %v1240_v29 = vmul.f32 -1.442695, %v966_v26 }
0x1417   :  { %1589 = vpow2.f32 %v1240_v29 }
0x141f   :  { %v1588_v28 = vpop.eup %1587 }
0x1420   :  { %976 = vrot.lane.b32.xlu0 %v1588_v28, %s1630_s19 }
0x1421   :  { %v1590_v30 = vpop.eup %1589 }
0x1422   :  { %v970_v31 = vadd.f32 1.0, %v1590_v30 }
0x1424   :  { %1591 = vrcp.f32 %v970_v31 }
0x142e   :  { %v1592_v32 = vpop.eup %1591 }
0x142f   :  { %v974_v36 = vmul.f32 %v1592_v32, %v882_v12 }
0x1492   :  { %v977_v33 = vpop.permute.xlu0 %976 }
0x1493   :  { %v979_v35 = vmul.f32 %v1592_v32, %v977_v33 }
0x1495   :  { %981 = vrot.lane.b32.xlu1 %v979_v35, %s1631_s3 }
0x1507   :  { %v982_v37 = vpop.permute.xlu1 %981 }
0x1508   :  { %v984_v18 = vadd.f32 %v982_v37, %v974_v36 }
0x150a   :  { %1593 = vtanh.f32 %v984_v18 }
0x1514   :  { %v1594_v19 = vpop.eup %1593 }
0x1515   :  { %987 = vrot.lane.b32.xlu0 %v1594_v19, %s1630_s19 }
0x1587   :  { %v988_v38 = vpop.permute.xlu0 %987 }
0x1588   :  { %v990_v39 = vmul.f32 %v1592_v32, %v988_v38 }
0x158a   :  { %992 = vrot.lane.b32.xlu1 %v990_v39, %s1631_s3 }
0x15fc   :  { %v993_v40 = vpop.permute.xlu1 %992 }
0x15fd   :  { %995 = vst.msk [vmem:[#allocation2 + $0x38] sm:$0xff] %vm178_vm3, %v993_v40 }
0x1604   :  { %v1003_v41 = vld [vmem:[#allocation2 + $0x38] sm:$0xff] }
0x1605   :  { %1439 = vmatmul.mubr.msk.f32.gmra.mrb[16].mxu0 %vm178_vm3, %v1003_v41 }
0x16d8   :  { %v1440_v42 = vpop.f32.mrb[16].mxu0 }
0x16d9   :  { %v1141_v21 = vadd.f32 %v1440_v42, %v1857_v34  ;;  %v1135_v43 = vpop.f32.mrb[17].mxu0 }
0x16da   :  { %v1136_v44 = vadd.f32 %v1857_v34, %v1135_v43 }
0x16db   :  { %v1257_v45 = vmul.f32 -1.442695, %v1141_v21 }
0x16dc   :  { %v1256_v46 = vmul.f32 -1.442695, %v1136_v44 }
0x16dd   :  { %1595 = vpow2.f32 %v1257_v45 }
0x16de   :  { %1597 = vpow2.f32 %v1256_v46 }
0x16e7   :  { %v1596_v47 = vpop.eup %1595 }
0x16e8   :  { %v1598_v48 = vpop.eup %1597  ;;  %v1175_v49 = vadd.f32 1.0, %v1596_v47 }
0x16e9   :  { %v1174_v50 = vadd.f32 1.0, %v1598_v48 }
0x16ea   :  { %1599 = vrcp.f32 %v1175_v49 }
0x16eb   :  { %1601 = vrcp.f32 %v1174_v50 }
0x16f4   :  { %v1600_v51 = vpop.eup %1599 }
0x16f5   :  { %v1602_v52 = vpop.eup %1601  ;;  %1199 = vst [vmem:[#allocation3 + $0x38] sm:$0xff] %v1600_v51 }
0x16f6   :  { %1198 = vst [vmem:[#allocation3 + $0x30] sm:$0xff] %v1602_v52 }
0x16f7   :  { %1614 = shalt.err (!%p1611_p4)
}
0x16f8   :  { %s1615_s11 = scalar_lea.hbm %s1901_s6, 1024 }
0x16f9   :  { %p1616_p5 = scmp.ne.s32.totalorder %s1901_s6, %s1615_s11  ;;  %p1619_p6 = scmp.lt.u32.totalorder %s1615_s11, %s1901_s6 }
0x16fb   :  { %p1621_p7 = pnand %p1619_p6, %p1616_p5 }
0x16fd   :  { %1624 = shalt.err (!%p1621_p7)
}
0x16fe   :  { %s1633_s16 = smov 128   ;;  %s1634_s17 = smov 8  }
0x16ff   :  { %1211 = dma.vmem_to_hbm [thread:$0]  %s1206_s7, 1024, %s1901_s6, [#allocation4], %s1633_s16, %s1633_s16, %s1634_s17  }
0x1700   :  { %1625 = dma.done.wait [#allocation4], 1024  }
0x1701   :  { %1626 = vsyncadd [#allocation4], 4294966272 }
0x1702   :  { %1215 = vsyncpa [#allocation4], 1 }

</bundles_post_ra>
